<compile_context>
chip_gen: v5e
topology: v5e:2x2
jax: 0.10.0
libtpu: 0.0.40
codegen_flags: <defaults>
</compile_context>

<pallas_src>
import math

import jax
import jax.numpy as jnp
import numpy as np
from jax.experimental import pallas as pl
from jax.experimental.pallas import tpu as pltpu


# ---------------------------------------------------------------------------
# Kernel: single fused GEMM  out[T, TN] = M_aug[T, Lp] @ X_aug[Lp, TN]
# (bias folded in via a ones-row of X_aug / bias-column of M_aug)
# ---------------------------------------------------------------------------
def _dlinear_cond_kernel(x_ref, m_ref, o_ref):
    o_ref[...] = jnp.dot(m_ref[...], x_ref[...], preferred_element_type=jnp.float32)


def dlinear_conditioner(x, m, b, *, lane_tile=128):
    """x: [B, L, C] observed_data; m: [T, L] fused operator; b: [T, 1] fused bias.

    Returns [B, T, C] (same layout as dft(...) of the PyTorch module output).
    """
    B, L, C = x.shape
    T = m.shape[0]
    n = B * C
    n_pad = pl.cdiv(n, lane_tile) * lane_tile
    lp = pl.cdiv(L + 1, 8) * 8  # K dim: L weight rows + 1 bias row, sublane-aligned

    # Fold batch & channels into the lane axis: [B, L, C] -> [L, B*C]; append ones-row so
    # the bias rides the MXU contraction.  Zero-padding keeps padded lanes/rows inert.
    x2 = jnp.transpose(x, (1, 0, 2)).reshape(L, n).astype(jnp.float32)
    x_aug = jnp.zeros((lp, n_pad), jnp.float32)
    x_aug = x_aug.at[:L, :n].set(x2).at[L, :].set(1.0)

    m_aug = jnp.zeros((T, lp), jnp.float32)
    m_aug = m_aug.at[:, :L].set(m).at[:, L].set(b[:, 0])

    out = pl.pallas_call(
        _dlinear_cond_kernel,
        out_shape=jax.ShapeDtypeStruct((T, n_pad), jnp.float32),
        grid_spec=pltpu.PrefetchScalarGridSpec(
            num_scalar_prefetch=0,
            grid=(n_pad // lane_tile,),
            in_specs=[
                pl.BlockSpec((lp, lane_tile), lambda i: (0, i)),  # X_aug lane-tile
                pl.BlockSpec((T, lp), lambda i: (0, 0)),          # fused operator (resident)
            ],
            out_specs=pl.BlockSpec((T, lane_tile), lambda i: (0, i)),
        ),
        compiler_params=pltpu.CompilerParams(dimension_semantics=("parallel",)),
    )(x_aug, m_aug)

    # Layout plumbing back to [B, T, C] (XLA, outside the kernel).
    return out[:, :n].reshape(T, B, C).transpose(1, 0, 2)


# ---------------------------------------------------------------------------
# One-time parameter setup (plain JAX): build and fuse the constant operators.
# ---------------------------------------------------------------------------
def moving_avg_matrix(L, kernel_size):
    """[L, L] matrix implementing AvgPool1d(kernel_size, stride=1) with replicate padding."""
    pad = (kernel_size - 1) // 2
    padded_idx = jnp.clip(jnp.arange(L + 2 * pad) - pad, 0, L - 1)               # [L + 2*pad]
    win = padded_idx[jnp.arange(L)[:, None] + jnp.arange(kernel_size)[None, :]]  # [L, K]
    onehot = jax.nn.one_hot(win, L, dtype=jnp.float32)                           # [L, K, L]
    return onehot.sum(axis=1) / kernel_size                                      # [L, L]


def dft_matrix(T):
    """[T, T] matrix: rfft(norm='ortho') real rows then non-trivial imaginary rows."""
    F = T // 2 + 1
    tt = jnp.arange(T, dtype=jnp.float32)
    ff = jnp.arange(F, dtype=jnp.float32)
    ang = 2.0 * jnp.pi * ff[:, None] * tt[None, :] / T
    scale = 1.0 / jnp.sqrt(jnp.asarray(T, jnp.float32))
    d_re = jnp.cos(ang) * scale
    d_im = -jnp.sin(ang) * scale
    imag_end = F - 1 if T % 2 == 0 else F   # drop im[0]; drop im[-1] too when T is even
    return jnp.concatenate([d_re, d_im[1:imag_end]], axis=0)                     # [T, T]


def build_fused_operator(ws, wt, bs, bt, L, kernel_size, T):
    """Fuse series_decomp + linear heads + real-DFT into M [T, L] and b [T, 1].

    The dense [L, L] moving-average matrix exists only transiently at setup; it never
    enters the kernel's VMEM footprint (only [T, Lp] + the lane-tiled input do).
    """
    a = moving_avg_matrix(L, kernel_size)                    # [L, L]
    d = dft_matrix(T)                                        # [T, T]
    eye = jnp.eye(L, dtype=jnp.float32)
    m = d @ (ws @ (eye - a) + wt @ a)                        # [T, L]
    b = d @ (bs + bt)                                        # [T, 1]
    return m, b


if __name__ == "__main__":
    # Module config (small): seq_channels=4, seq_length=16, target_seq_length=8, moving_avg=25.
    B, C, L, T = 2, 4, 16, 8
    K = 25  # kwargs.get('moving_avg', 25)

    key = jax.random.PRNGKey(0)
    kx, kbs, kbt = jax.random.split(key, 3)
    x = jax.random.normal(kx, (B, L, C), dtype=jnp.float32)

    # Deterministic parameter init matching the module's __init__:
    # weights are 1/seq_length * ones; biases use nn.Linear's default uniform(-1/sqrt(L), 1/sqrt(L)).
    ws = jnp.full((T, L), 1.0 / L, dtype=jnp.float32)
    wt = jnp.full((T, L), 1.0 / L, dtype=jnp.float32)
    bound = 1.0 / math.sqrt(L)
    bs = jax.random.uniform(kbs, (T, 1), minval=-bound, maxval=bound, dtype=jnp.float32)
    bt = jax.random.uniform(kbt, (T, 1), minval=-bound, maxval=bound, dtype=jnp.float32)

    # NOTE: the fused operator stays in f32 — bf16 would double MXU throughput but can
    # exceed the 1e-4 validation tolerance at this scale.
    m_fused, b_fused = build_fused_operator(ws, wt, bs, bt, L, K, T)

    y = dlinear_conditioner(x, m_fused, b_fused)
    y = jax.block_until_ready(y)
    assert y.shape == (B, T, C)

    # Fully independent numpy reference (un-fused, mirrors the PyTorch module).
    xn = np.asarray(x, dtype=np.float64)
    ws_n, wt_n = np.asarray(ws, np.float64), np.asarray(wt, np.float64)
    bs_n, bt_n = np.asarray(bs, np.float64), np.asarray(bt, np.float64)
    pad = (K - 1) // 2
    xp = np.concatenate(
        [np.repeat(xn[:, :1], pad, axis=1), xn, np.repeat(xn[:, -1:], pad, axis=1)], axis=1)
    trend = np.stack([xp[:, i:i + K].mean(axis=1) for i in range(L)], axis=1)    # [B, L, C]
    seasonal = xn - trend
    xo = (np.einsum("blc,tl->btc", seasonal, ws_n) + bs_n[:, 0][None, :, None]
          + np.einsum("blc,tl->btc", trend, wt_n) + bt_n[:, 0][None, :, None])   # [B, T, C]
    rf = np.fft.rfft(xo, axis=1, norm="ortho")
    im = rf.imag[:, 1:]
    if T % 2 == 0:
        im = im[:, :-1]
    y_ref = np.concatenate([rf.real, im], axis=1)                                # [B, T, C]

    np.testing.assert_allclose(np.asarray(y), y_ref, atol=1e-4, rtol=1e-4)
    print("KERNEL_OK")
</pallas_src>

<mosaic_0001>
module attributes {stable_mosaic.version = 11 : i64} {
  func.func @_dlinear_cond_kernel(%arg0: i32, %arg1: memref<24x128xf32, #tpu.memory_space<vmem>>, %arg2: memref<8x24xf32, #tpu.memory_space<vmem>>, %arg3: memref<8x128xf32, #tpu.memory_space<vmem>>) attributes {dimension_semantics = [#tpu.dimension_semantics<parallel>], iteration_bounds = array<i64: 1>, scalar_prefetch = 0 : i64, scratch_operands = 0 : i64, tpu.core_type = #tpu.core_type<tc>, window_params = [{transform_indices = @transform_0, window_bounds = array<i64: 24, 128>}, {pipeline_mode = #tpu.pipeline_mode<synchronous>, transform_indices = @transform_1, window_bounds = array<i64: 8, 24>}, {transform_indices = @transform_2, window_bounds = array<i64: 8, 128>}]} {
    %c0 = arith.constant 0 : index
    %c0_0 = arith.constant 0 : index
    %0 = vector.load %arg2[%c0, %c0_0] : memref<8x24xf32, #tpu.memory_space<vmem>>, vector<8x24xf32>
    %c0_1 = arith.constant 0 : index
    %c0_2 = arith.constant 0 : index
    %1 = vector.load %arg1[%c0_1, %c0_2] : memref<24x128xf32, #tpu.memory_space<vmem>>, vector<24x128xf32>
    %cst = arith.constant dense<0.000000e+00> : vector<8x128xf32>
    %2 = tpu.matmul %0, %1, %cst {dimension_numbers = #tpu.dot_dimension_numbers<[1], [0], [0], [1], [0, 0, 1, 1], [], []>} : vector<8x24xf32>, vector<24x128xf32>, vector<8x128xf32> -> vector<8x128xf32>
    %c0_3 = arith.constant 0 : index
    %c0_4 = arith.constant 0 : index
    %3 = vector.load %arg3[%c0_3, %c0_4] : memref<8x128xf32, #tpu.memory_space<vmem>>, vector<8x128xf32>
    tpu.vector_store %arg3[%c0_3, %c0_4], %2 {strides = array<i32>} : memref<8x128xf32, #tpu.memory_space<vmem>>, vector<8x128xf32>,
    return
  }
  func.func @transform_0(%arg0: i32) -> (i32, i32) {
    %c0_i32 = arith.constant 0 : i32
    %c0_i32_0 = arith.constant 0 : i32
    return %c0_i32, %arg0 : i32, i32
  }
  func.func @transform_1(%arg0: i32) -> (i32, i32) {
    %c0_i32 = arith.constant 0 : i32
    %c0_i32_0 = arith.constant 0 : i32
    %c0_i32_1 = arith.constant 0 : i32
    return %c0_i32, %c0_i32_0 : i32, i32
  }
  func.func @transform_2(%arg0: i32) -> (i32, i32) {
    %c0_i32 = arith.constant 0 : i32
    %c0_i32_0 = arith.constant 0 : i32
    return %c0_i32, %arg0 : i32, i32
  }
}

</mosaic_0001>

<bundles_post_ra>
// kernel: tpu_custom_call.1
= control target key start
LH: loop header
LB: loop body
LE: loop exit
PB: predicated region body
PF: predicated region fallthrough
CT: control target
= control target key end

     0   :  { %7 = vsyncpa [#allocation3], 0  ;;  %s202_s0 = inlined_call_operand.hbm [shape: f32[24,128], index: 0, kind: input, shape index: {}]   ;;  %s203_s1 = inlined_call_operand.hbm [shape: f32[8,24], index: 1, kind: input, shape index: {}]   ;;  %s204_s2 = inlined_call_operand.hbm [shape: f32[8,128], index: 2, kind: output, shape index: {}]  }
   0x1   :  { %8 = vsyncpa [#allocation6], 0 }
   0x2   :  { %9 = vsyncpa [#allocation4], 0  ;;  %s14_s11 = sshll.u32 %s202_s0, 4  ;;  %s173_s12 = smov [#allocation2]   ;;  %s15_s11 = int_to_ptr.hbm [resolvable:$true] %s14_s11 }
   0x3   :  { %s16_s13 = sshll.u32 %s173_s12, 4  ;;  %s28_s16 = sshll.u32 %s203_s1, 4  ;;  %s17_s13 = int_to_ptr.vmem [resolvable:$true] %s16_s13  ;;  %s29_s16 = int_to_ptr.hbm [resolvable:$true] %s28_s16 }
   0x4   :  { %s174_s17 = smov 128   ;;  %s175_s18 = smov 8  }
   0x5   :  { %22 = dma.hbm_to_vmem [thread:$0]  %s15_s11, 384, %s17_s13, [#allocation3], %s174_s17, %s174_s17, %s175_s18  }
   0x6   :  { %s176_s19 = smov [#allocation5]  }
   0x7   :  { %s30_s20 = sshll.u32 %s176_s19, 4  ;;  %s31_s20 = int_to_ptr.vmem [resolvable:$true] %s30_s20 }
   0x8   :  { %33 = dma.hbm_to_vmem [thread:$0]  %s29_s16, 128, %s31_s20, [#allocation6]  }
   0x9   :  { %167 = dma.done.wait [#allocation3], 384  }
   0xa   :  { %168 = vsyncadd [#allocation3], 4294966912 }
   0xb   :  { %169 = dma.done.wait [#allocation6], 128  }
   0xc   :  { %170 = vsyncadd [#allocation6], 4294967168  ;;  %v45_v0 = vld [vmem:[#allocation2 + $0x10] sm:$0xff]  ;;  %v44_v1 = vld [vmem:[#allocation2 + $0x8] sm:$0xff]  ;;  %vm46_vm0 = vcmask 195584   ;;  %s177_s0 = smov [#allocation7]  }
   0xd   :  { %63 = vmatpush.msra.mxu0 %v45_v0  ;;  %v43_v2 = vld [vmem:[#allocation2] sm:$0xff]  ;;  %v42_v3 = vld [vmem:[#allocation5] sm:$0xff]  ;;  %s76_s1 = sshll.u32 %s177_s0, 4  ;;  %s78_s23 = sshll.u32 %s204_s2, 4  ;;  %s77_s1 = int_to_ptr.vmem [resolvable:$true] %s76_s1  ;;  %s79_s23 = int_to_ptr.hbm [resolvable:$true] %s78_s23 }
   0xf   :  { %64 = vmatpush.msra.mxu0 %v44_v1 }
  0x11   :  { %65 = vmatpush.msra.mxu0 %v43_v2 }
  0x12   :  { %89 = vmatmul.msk.f32.vlgmr.msra.gmra.mxu0 %vm46_vm0, %v42_v3 }
  0x8f   :  { %v67_v4 = vpop.f32.mrf.mxu0 }
  0x90   :  { %70 = vst [vmem:[#allocation7] sm:$0xff] %v67_v4 }
  0x91   :  { %81 = dma.vmem_to_hbm [thread:$0]  %s77_s1, 128, %s79_s23, [#allocation4]  }
  0x92   :  { %171 = dma.done.wait [#allocation4], 128  }
  0x93   :  { %172 = vsyncadd [#allocation4], 4294967168 }
  0x94   :  { %86 = vsyncpa [#allocation3], 1 }
  0x95   :  { %87 = vsyncpa [#allocation6], 1 }
  0x96   :  { %88 = vsyncpa [#allocation4], 1 }

</bundles_post_ra>
